<compile_context>
chip_gen: v6e
topology: v6e:2x2x1
jax: 0.10.0
libtpu: 0.0.40
codegen_flags: <defaults>
</compile_context>

<pallas_src>
import functools

import jax
import jax.numpy as jnp
from jax import lax
from jax.experimental import pallas as pl
from jax.experimental.pallas import tpu as pltpu

LANES = 128
SUBLANES = 8
CHUNK_ROWS = 512                      # rows per in-kernel reduction chunk (256 KiB f32)
TILE_TARGET_BYTES = 4 * 1024 * 1024   # ~4 MiB streamed per grid step


def _round_up(a, b):
    return -(-a // b) * b


def _gray_loss_kernel(x_ref, o_ref, *, tile_rows, chunk_rows, n_valid_rows,
                      needs_mask):
    """Reduce one (tile_rows, 128) tile to an (8, 128) f32 partial sum of |x-0.5|."""
    i = pl.program_id(0)
    n_chunks = tile_rows // chunk_rows

    def body(c, acc):
        r0 = pl.multiple_of(c * chunk_rows, chunk_rows)
        xc = x_ref[pl.ds(r0, chunk_rows), :].astype(jnp.float32)
        d = jnp.abs(xc - jnp.float32(0.5))
        if needs_mask:
            # Last block may read past the array's rows: undefined data there
            # (possibly NaN) is discarded by a select, never combined
            # arithmetically, so it cannot poison the sum.
            rows = (i * tile_rows + c * chunk_rows
                    + lax.broadcasted_iota(jnp.int32, d.shape, 0))
            d = jnp.where(rows < n_valid_rows, d, jnp.float32(0.0))
        # (chunk_rows,128) -> (chunk_rows//8, 8, 128) groups whole vregs, so the
        # reduce is pure VPU vreg+vreg adds; live temporaries stay chunk-sized.
        return acc + jnp.sum(
            d.reshape(chunk_rows // SUBLANES, SUBLANES, LANES), axis=0)

    acc0 = jnp.zeros((SUBLANES, LANES), jnp.float32)
    o_ref[...] = lax.fori_loop(0, n_chunks, body, acc0, unroll=True)


def gray_loss(x, *, tile_rows=None):
    """Returns 1 / mean(|x - 0.5|)  ==  1 / L1Loss(x, 0.5 * ones_like(x))."""
    xf = x.reshape(-1)                     # free for contiguous inputs
    n = xf.size
    n_rows = n // LANES
    rem = n - n_rows * LANES

    # <128-element flat tail handled with plain jnp in the wrapper.
    if rem:
        tail = xf[n_rows * LANES:].astype(jnp.float32)
        tail_sum = jnp.sum(jnp.abs(tail - jnp.float32(0.5)))
    else:
        tail_sum = jnp.float32(0.0)

    if n_rows == 0:
        # Degenerate: fewer than 128 elements total.
        return jnp.float32(n) / tail_sum

    if rem == 0:
        x2d = xf.reshape(n_rows, LANES)    # zero-copy (common case)
    else:
        # Ragged: one fused copy of the 128-aligned prefix, rows padded to a
        # sublane multiple with 0.5 (|0.5 - 0.5| = 0 -> contributes nothing).
        rows_pad = _round_up(n_rows, SUBLANES)
        aligned = xf[: n_rows * LANES]
        pad = jnp.full((rows_pad * LANES - n_rows * LANES,), 0.5, dtype=x.dtype)
        x2d = jnp.concatenate([aligned, pad]).reshape(rows_pad, LANES)
        n_rows = rows_pad

    # Dtype-aware tile sizing: keep ~TILE_TARGET_BYTES streamed per grid step.
    if tile_rows is None:
        itemsize = jnp.dtype(x.dtype).itemsize
        tile_rows = max(CHUNK_ROWS, TILE_TARGET_BYTES // (itemsize * LANES))
    tile_rows = max(SUBLANES, (tile_rows // SUBLANES) * SUBLANES)

    rows8 = _round_up(n_rows, SUBLANES)
    tile_eff = min(tile_rows, rows8)
    if tile_eff > CHUNK_ROWS:
        chunk_rows = CHUNK_ROWS
        tile_eff = _round_up(tile_eff, chunk_rows)
    else:
        chunk_rows = tile_eff

    num_blocks = pl.cdiv(n_rows, tile_eff)
    needs_mask = (num_blocks * tile_eff) != n_rows

    kernel = functools.partial(
        _gray_loss_kernel,
        tile_rows=tile_eff,
        chunk_rows=chunk_rows,
        n_valid_rows=n_rows,
        needs_mask=needs_mask,
    )

    def _make_in_spec():
        if num_blocks > 2:
            try:
                # Deeper input buffering hides DMA issue gaps on long streams.
                return pl.BlockSpec((tile_eff, LANES), lambda i: (i, 0),
                                    pipeline_mode=pl.Buffered(3))
            except (TypeError, AttributeError):
                pass  # older BlockSpec signature: fall back to default depth
        return pl.BlockSpec((tile_eff, LANES), lambda i: (i, 0))

    partials = pl.pallas_call(
        kernel,
        out_shape=jax.ShapeDtypeStruct((num_blocks * SUBLANES, LANES),
                                       jnp.float32),
        grid_spec=pltpu.PrefetchScalarGridSpec(
            num_scalar_prefetch=0,
            grid=(num_blocks,),
            in_specs=[_make_in_spec()],
            out_specs=pl.BlockSpec((SUBLANES, LANES), lambda i: (i, 0)),
        ),
        compiler_params=pltpu.CompilerParams(
            dimension_semantics=("parallel",),
            vmem_limit_bytes=32 * 1024 * 1024,
        ),
    )(x2d)

    # 1 / mean(|x - 0.5|) == n / sum(|x - 0.5|); final tiny reduction and the
    # reciprocal done by XLA over a few KiB of per-block partials.
    total = jnp.sum(partials) + tail_sum
    return jnp.float32(n) / total


def gray_loss_ref(x):
    return 1.0 / jnp.mean(jnp.abs(x.astype(jnp.float32) - 0.5))


if __name__ == "__main__":
    key = jax.random.PRNGKey(0)
    k1, k2, k3 = jax.random.split(key, 3)

    # 1) Main case: NCHW like the PyTorch module, lane-aligned (zero-copy path).
    x1 = jax.random.uniform(k1, (2, 4, 16, 16), dtype=jnp.float32)
    out1 = jax.block_until_ready(gray_loss(x1))
    ref1 = gray_loss_ref(x1)
    assert jnp.allclose(out1, ref1, rtol=1e-5, atol=1e-5), (out1, ref1)

    # 2) Ragged case: exercises the aligned-prefix + wrapper-tail path.
    x2 = jax.random.uniform(k2, (3, 5, 7, 11), dtype=jnp.float32)
    out2 = jax.block_until_ready(gray_loss(x2))
    ref2 = gray_loss_ref(x2)
    assert jnp.allclose(out2, ref2, rtol=1e-5, atol=1e-5), (out2, ref2)

    # 3) Multi-block grid with a non-dividing tile: exercises the partial last
    #    block + row mask + Buffered(3) pipeline path (tile_rows override keeps
    #    the test small).
    x3 = jax.random.uniform(k3, (2, 4, 41, 32), dtype=jnp.float32)
    out3 = jax.block_until_ready(gray_loss(x3, tile_rows=16))
    ref3 = gray_loss_ref(x3)
    assert jnp.allclose(out3, ref3, rtol=1e-5, atol=1e-5), (out3, ref3)

    print("KERNEL_OK")
</pallas_src>

<mosaic_0001>
module attributes {stable_mosaic.version = 11 : i64} {
  func.func @_gray_loss_kernel(%arg0: i32, %arg1: memref<16x128xf32, #tpu.memory_space<vmem>>, %arg2: memref<8x128xf32, #tpu.memory_space<vmem>>) attributes {dimension_semantics = [#tpu.dimension_semantics<parallel>], iteration_bounds = array<i64: 1>, scalar_prefetch = 0 : i64, scratch_operands = 0 : i64, tpu.core_type = #tpu.core_type<tc>, window_params = [{transform_indices = @transform_0, window_bounds = array<i64: 16, 128>}, {transform_indices = @transform_1, window_bounds = array<i64: 8, 128>}]} {
    %cst = arith.constant 0.000000e+00 : f32
    %0 = vector.broadcast %cst : f32 to vector<8x128xf32>
    %c0_i32 = arith.constant 0 : i32
    %c16_i32 = arith.constant 16 : i32
    %1 = arith.muli %c0_i32, %c16_i32 : i32
    %2 = tpu.assume_multiple %1, 16 : i32
    %3 = arith.index_cast %2 : i32 to index
    %c0 = arith.constant 0 : index
    %4 = vector.load %arg1[%3, %c0] : memref<16x128xf32, #tpu.memory_space<vmem>>, vector<16x128xf32>
    %cst_0 = arith.constant 5.000000e-01 : f32
    %5 = vector.broadcast %cst_0 : f32 to vector<16x128xf32>
    %6 = arith.subf %4, %5 : vector<16x128xf32>
    %7 = math.absf %6 : vector<16x128xf32>
    %8 = vector.shape_cast %7 : vector<16x128xf32> to vector<2x8x128xf32>
    %cst_1 = arith.constant dense<0.000000e+00> : vector<8x128xf32>
    %9 = vector.multi_reduction <add>, %8, %cst_1 [0] : vector<2x8x128xf32> to vector<8x128xf32>
    %10 = arith.addf %0, %9 : vector<8x128xf32>
    %c1_i32 = arith.constant 1 : i32
    %c0_2 = arith.constant 0 : index
    %c0_3 = arith.constant 0 : index
    %11 = vector.load %arg2[%c0_2, %c0_3] : memref<8x128xf32, #tpu.memory_space<vmem>>, vector<8x128xf32>
    tpu.vector_store %arg2[%c0_2, %c0_3], %10 {strides = array<i32>} : memref<8x128xf32, #tpu.memory_space<vmem>>, vector<8x128xf32>,
    return
  }
  func.func @transform_0(%arg0: i32) -> (i32, i32) {
    %c0_i32 = arith.constant 0 : i32
    %c0_i32_0 = arith.constant 0 : i32
    return %arg0, %c0_i32 : i32, i32
  }
  func.func @transform_1(%arg0: i32) -> (i32, i32) {
    %c0_i32 = arith.constant 0 : i32
    %c0_i32_0 = arith.constant 0 : i32
    return %arg0, %c0_i32 : i32, i32
  }
}

</mosaic_0001>

<bundles_post_ra>
// kernel: tpu_custom_call.1
= control target key start
LH: loop header
LB: loop body
LE: loop exit
PB: predicated region body
PF: predicated region fallthrough
CT: control target
= control target key end

     0   :  { %6 = vsyncpa [#allocation3], 0  ;;  %s117_s0 = inlined_call_operand.hbm [shape: f32[16,128], index: 0, kind: input, shape index: {}]   ;;  %s118_s1 = inlined_call_operand.hbm [shape: f32[8,128], index: 1, kind: output, shape index: {}]  }
   0x1   :  { %7 = vsyncpa [#allocation4], 0  ;;  %s97_s6 = smov [#allocation2]  }
   0x2   :  { %s13_s7 = sshll.u32 %s97_s6, 4  ;;  %s14_s7 = int_to_ptr.vmem [resolvable:$true] %s13_s7 }
   0x3   :  { %s61_s8 = scalar_lea.vmem %s14_s7, 256  ;;  %p66_p1 = scmp.lt.s32.totalorder %s14_s7, %s14_s7 }
   0x4   :  { %p62_p0 = scmp.ne.s32.totalorder %s14_s7, %s61_s8  ;;  %p67_p2 = scmp.lt.s32.totalorder %s61_s8, %s61_s8 }
   0x6   :  { %p68_p3 = por %p67_p2, %p66_p1 }
   0x8   :  { %p69_p4 = pnand %p68_p3, %p62_p0 }
   0xa   :  { %72 = shalt.err (!%p69_p4)
}
   0xb   :  { %s98_s9 = smov 128   ;;  %s99_s10 = smov 8  }
   0xc   :  { %19 = dma.hbm_to_vmem [thread:$0]  %s117_s0, 256, %s14_s7, [#allocation3], %s98_s9, %s98_s9, %s99_s10  }
   0xd   :  { %93 = dma.done.wait [#allocation3], 256  }
   0xe   :  { %94 = vsyncadd [#allocation3], 4294967040  ;;  %v23_v0 = vld [vmem:[#allocation2] sm:$0xff]  ;;  %v24_v1 = vld [vmem:[#allocation2 + $0x8] sm:$0xff]  ;;  %s100_s13 = smov [#allocation5]  }
   0xf   :  { %v47_v2 = vadd.f32 -0.5, %v23_v0  ;;  %v48_v3 = vadd.f32 -0.5, %v24_v1  ;;  %s38_s14 = sshll.u32 %s100_s13, 4  ;;  %s39_s14 = int_to_ptr.vmem [resolvable:$true] %s38_s14 }
  0x10   :  { %s73_s15 = scalar_lea.vmem %s39_s14, 128  ;;  %p78_p6 = scmp.lt.s32.totalorder %s39_s14, %s39_s14 }
  0x11   :  { %v27_v4 = vand.u32 2147483647, %v47_v2  ;;  %v28_v5 = vand.u32 2147483647, %v48_v3  ;;  %p74_p5 = scmp.ne.s32.totalorder %s39_s14, %s73_s15  ;;  %p79_p7 = scmp.lt.s32.totalorder %s73_s15, %s73_s15 }
  0x13   :  { %v29_v6 = vadd.f32 %v28_v5, %v27_v4  ;;  %p80_p8 = por %p79_p7, %p78_p6 }
  0x15   :  { %31 = vst [vmem:[#allocation5] sm:$0xff] %v29_v6  ;;  %p81_p9 = pnand %p80_p8, %p74_p5 }
  0x17   :  { %84 = shalt.err (!%p81_p9)
}
  0x18   :  { %41 = dma.vmem_to_hbm [thread:$0]  %s39_s14, 128, %s118_s1, [#allocation4]  }
  0x19   :  { %95 = dma.done.wait [#allocation4], 128  }
  0x1a   :  { %96 = vsyncadd [#allocation4], 4294967168 }
  0x1b   :  { %45 = vsyncpa [#allocation3], 1 }
  0x1c   :  { %46 = vsyncpa [#allocation4], 1 }

</bundles_post_ra>
